<compile_context>
chip_gen: v5e
topology: v5e:2x2
jax: 0.10.0
libtpu: 0.0.40
codegen_flags: <defaults>
</compile_context>

<pallas_src>
import functools

import jax
import jax.numpy as jnp
from jax.experimental import pallas as pl
from jax.experimental.pallas import tpu as pltpu

_LANE = 128
_SUBLANE = 8
_TM_MAX = 512                      # batch tile cap (review: 512-1024)
_VMEM_LIMIT_BYTES = 48 * 1024 * 1024   # sized to v7x's 64 MiB physical VMEM
_SINGLE_BUF_BYTES = 2 * 1024 * 1024    # single-buffer grid-invariant params >= this


def _round_up(x: int, m: int) -> int:
    return ((x + m - 1) // m) * m


def _make_actor_kernel(num_hidden_layers: int):
    """Fused kernel: (split-concat Linear)+ReLU, N*(Linear+ReLU), Linear+tanh."""

    def kernel(state_ref, goal_ref, *refs):
        # refs = (w_s, w_g, b_in, [w_h0, b_h0, ...], w_out, b_out, o_ref)
        o_ref = refs[-1]
        p = refs[:-1]

        w_s, w_g, b_in = p[0], p[1], p[2]
        # Fused concat: x @ W_in == state @ W_in[:S] + goal @ W_in[S:]
        acc = jnp.dot(state_ref[...].astype(w_s.dtype), w_s[...],
                      preferred_element_type=jnp.float32)
        acc = acc + jnp.dot(goal_ref[...].astype(w_g.dtype), w_g[...],
                            preferred_element_type=jnp.float32)
        # f32 bias+ReLU epilogue, then carry the activation as bf16 (halves
        # vreg / VMEM pressure of the (tm, hidden_pad) intermediate; no further
        # bf16 VPU math is done, so this is v5e-safe).
        h = jnp.maximum(acc + b_in[...], 0.0).astype(jnp.bfloat16)

        idx = 3
        for _ in range(num_hidden_layers):
            w, b = p[idx], p[idx + 1]
            idx += 2
            z = jnp.dot(h, w[...], preferred_element_type=jnp.float32)
            h = jnp.maximum(z + b[...], 0.0).astype(jnp.bfloat16)

        w_out, b_out = p[idx], p[idx + 1]
        y = jnp.dot(h, w_out[...], preferred_element_type=jnp.float32)
        o_ref[...] = jnp.tanh(y + b_out[...]).astype(o_ref.dtype)

    return kernel


def init_actor_params(key, input_size, hidden_size, hidden_layers, output_size):
    """nn.Linear-style init (uniform +/- 1/sqrt(fan_in)); weights stored (in, out)."""
    params = []
    dims = [(input_size, hidden_size)]
    dims += [(hidden_size, hidden_size) for _ in range(hidden_layers)]
    dims += [(hidden_size, output_size)]
    for (fan_in, fan_out) in dims:
        key, kw, kb = jax.random.split(key, 3)
        bound = 1.0 / jnp.sqrt(jnp.float32(fan_in))
        w = jax.random.uniform(kw, (fan_in, fan_out), jnp.float32, -bound, bound)
        b = jax.random.uniform(kb, (1, fan_out), jnp.float32, -bound, bound)
        params.append((w, b))
    return params


def prepare_actor_params(params, state_size):
    """One-time prep: split W_in for the fused concat, zero-pad hidden/output
    feature dims to 128-lane multiples (mathematically exact), cast weights to
    bf16 (halves weight DMA bytes); biases stay f32 for the f32 epilogue."""
    w_in, b_in = params[0]
    hidden_size = w_in.shape[1]
    output_size = params[-1][0].shape[1]
    hidden_pad = _round_up(hidden_size, _LANE)
    out_pad = _round_up(output_size, _LANE)

    def pad_w(w, rows, cols):
        return jnp.pad(w, ((0, rows - w.shape[0]), (0, cols - w.shape[1]))
                       ).astype(jnp.bfloat16)

    def pad_b(b, cols):
        return jnp.pad(b, ((0, 0), (0, cols - b.shape[1]))).astype(jnp.float32)

    w_s = pad_w(w_in[:state_size], state_size, hidden_pad)
    w_g = pad_w(w_in[state_size:], w_in.shape[0] - state_size, hidden_pad)
    prepared = [w_s, w_g, pad_b(b_in, hidden_pad)]
    for (w, b) in params[1:-1]:
        prepared += [pad_w(w, hidden_pad, hidden_pad), pad_b(b, hidden_pad)]
    w_out, b_out = params[-1]
    prepared += [pad_w(w_out, hidden_pad, out_pad), pad_b(b_out, out_pad)]
    return tuple(prepared)


def _param_spec(p):
    """Grid-invariant BlockSpec for a weight/bias; single-buffered when large
    (double-buffering a constant block is pure VMEM waste)."""
    idx_map = lambda i: (0, 0)
    nbytes = p.size * p.dtype.itemsize
    if nbytes >= _SINGLE_BUF_BYTES and hasattr(pl, "Buffered"):
        try:
            return pl.BlockSpec(p.shape, idx_map, pipeline_mode=pl.Buffered(1))
        except TypeError:
            pass  # older jax without pipeline_mode: fall back to default
    return pl.BlockSpec(p.shape, idx_map)


def _pick_batch_tile(B: int) -> int:
    """Choose the batch tile (multiple of 8 sublanes).

    - B <= 128: single tile (padded to 8 sublanes).
    - 128 < B <= 2*_TM_MAX: split into two tiles so the "parallel" grid axis
      can shard across v7x's two TensorCores (harmless elsewhere).
    - larger: stream tiles of _TM_MAX.
    """
    if B <= 128:
        return _round_up(max(B, 1), _SUBLANE)
    if B <= 2 * _TM_MAX:
        return _round_up(-(-B // 2), _SUBLANE)
    return _TM_MAX


@functools.partial(jax.jit, static_argnames=("hidden_layers", "output_size"))
def actor_forward(state, goal, prepared_params, hidden_layers, output_size):
    """Run the fused Pallas MLP kernel; returns (B, output_size) f32."""
    B, state_size = state.shape
    goal_size = goal.shape[1]
    out_pad = prepared_params[-1].shape[1]

    tm = _pick_batch_tile(B)
    b_pad = _round_up(B, tm)
    if b_pad != B:
        state = jnp.pad(state, ((0, b_pad - B), (0, 0)))
        goal = jnp.pad(goal, ((0, b_pad - B), (0, 0)))

    kernel = _make_actor_kernel(hidden_layers)
    grid = (b_pad // tm,)

    act_spec = lambda d: pl.BlockSpec((tm, d), lambda i: (i, 0))
    param_specs = [_param_spec(p) for p in prepared_params]

    out = pl.pallas_call(
        kernel,
        out_shape=jax.ShapeDtypeStruct((b_pad, out_pad), jnp.float32),
        grid=grid,
        in_specs=[act_spec(state_size), act_spec(goal_size)] + param_specs,
        out_specs=pl.BlockSpec((tm, out_pad), lambda i: (i, 0)),  # lane-dense store
        compiler_params=pltpu.CompilerParams(
            dimension_semantics=("parallel",),        # batch tiles over v7x's 2 TCs
            vmem_limit_bytes=_VMEM_LIMIT_BYTES),      # above 16/32 MiB scoped default
    )(state, goal, *prepared_params)

    return out[:B, :output_size]


if __name__ == "__main__":
    # Module-consistent small shapes:
    #   state: (2, 12), goal: (2, 4) -> input_size = 16
    #   hidden_size = 32, hidden_layers = 2, output_size = 8
    batch = 2
    state_size, goal_size = 12, 4
    input_size = state_size + goal_size
    hidden_size = 32
    hidden_layers = 2
    output_size = 8

    key = jax.random.PRNGKey(0)
    key, ks, kg, kp = jax.random.split(key, 4)
    state = jax.random.normal(ks, (batch, state_size), jnp.float32)
    goal = jax.random.normal(kg, (batch, goal_size), jnp.float32)

    params = init_actor_params(kp, input_size, hidden_size, hidden_layers, output_size)
    prepared = prepare_actor_params(params, state_size)

    out = actor_forward(state, goal, prepared, hidden_layers, output_size)
    out = jax.block_until_ready(out)

    # Reference 1: pure-JAX replica of the kernel arithmetic (bf16 matmul,
    # f32 accumulation/epilogue, bf16 inter-layer activations) -> tight check.
    x = jnp.concatenate([state, goal], axis=1)
    h = x.astype(jnp.bfloat16)
    for li, (w, b) in enumerate(params):
        z = jnp.dot(h, w.astype(jnp.bfloat16),
                    preferred_element_type=jnp.float32) + b
        if li < len(params) - 1:
            h = jnp.maximum(z, 0.0).astype(jnp.bfloat16)
        else:
            h = jnp.tanh(z)
    ref_bf16 = h

    # Reference 2: the original f32 torch-equivalent forward -> loose check on
    # the bf16-vs-f32 precision gap (review's correctness concern).
    h32 = jnp.concatenate([state, goal], axis=1)
    for li, (w, b) in enumerate(params):
        z = h32 @ w + b
        h32 = jnp.maximum(z, 0.0) if li < len(params) - 1 else jnp.tanh(z)
    ref_f32 = h32

    assert out.shape == (batch, output_size)
    assert jnp.all(jnp.isfinite(out)), "non-finite output"
    assert jnp.allclose(out, ref_bf16, atol=1e-3, rtol=1e-3), \
        "mismatch vs bf16 reference"
    assert jnp.allclose(out, ref_f32, atol=2e-2, rtol=2e-2), \
        "bf16 precision gap vs f32 reference too large"

    print("KERNEL_OK")
</pallas_src>

<mosaic_0001>
module attributes {stable_mosaic.version = 11 : i64} {
  func.func @kernel(%arg0: i32, %arg1: memref<8x12xf32, #tpu.memory_space<vmem>>, %arg2: memref<8x4xf32, #tpu.memory_space<vmem>>, %arg3: memref<12x128xbf16, #tpu.memory_space<vmem>>, %arg4: memref<4x128xbf16, #tpu.memory_space<vmem>>, %arg5: memref<1x128xf32, #tpu.memory_space<vmem>>, %arg6: memref<128x128xbf16, #tpu.memory_space<vmem>>, %arg7: memref<1x128xf32, #tpu.memory_space<vmem>>, %arg8: memref<128x128xbf16, #tpu.memory_space<vmem>>, %arg9: memref<1x128xf32, #tpu.memory_space<vmem>>, %arg10: memref<128x128xbf16, #tpu.memory_space<vmem>>, %arg11: memref<1x128xf32, #tpu.memory_space<vmem>>, %arg12: memref<8x128xf32, #tpu.memory_space<vmem>>) attributes {dimension_semantics = [#tpu.dimension_semantics<parallel>], iteration_bounds = array<i64: 1>, scalar_prefetch = 0 : i64, scratch_operands = 0 : i64, tpu.core_type = #tpu.core_type<tc>, window_params = [{transform_indices = @transform_0, window_bounds = array<i64: 8, 12>}, {transform_indices = @transform_1, window_bounds = array<i64: 8, 4>}, {pipeline_mode = #tpu.pipeline_mode<synchronous>, transform_indices = @transform_2, window_bounds = array<i64: 12, 128>}, {pipeline_mode = #tpu.pipeline_mode<synchronous>, transform_indices = @transform_3, window_bounds = array<i64: 4, 128>}, {pipeline_mode = #tpu.pipeline_mode<synchronous>, transform_indices = @transform_4, window_bounds = array<i64: 1, 128>}, {pipeline_mode = #tpu.pipeline_mode<synchronous>, transform_indices = @transform_5, window_bounds = array<i64: 128, 128>}, {pipeline_mode = #tpu.pipeline_mode<synchronous>, transform_indices = @transform_6, window_bounds = array<i64: 1, 128>}, {pipeline_mode = #tpu.pipeline_mode<synchronous>, transform_indices = @transform_7, window_bounds = array<i64: 128, 128>}, {pipeline_mode = #tpu.pipeline_mode<synchronous>, transform_indices = @transform_8, window_bounds = array<i64: 1, 128>}, {pipeline_mode = #tpu.pipeline_mode<synchronous>, transform_indices = @transform_9, window_bounds = array<i64: 128, 128>}, {pipeline_mode = #tpu.pipeline_mode<synchronous>, transform_indices = @transform_10, window_bounds = array<i64: 1, 128>}, {transform_indices = @transform_11, window_bounds = array<i64: 8, 128>}]} {
    %c0 = arith.constant 0 : index
    %c0_0 = arith.constant 0 : index
    %0 = vector.load %arg1[%c0, %c0_0] : memref<8x12xf32, #tpu.memory_space<vmem>>, vector<8x12xf32>
    %1 = arith.truncf %0 : vector<8x12xf32> to vector<8x12xbf16>
    %c0_1 = arith.constant 0 : index
    %c0_2 = arith.constant 0 : index
    %2 = vector.load %arg3[%c0_1, %c0_2] : memref<12x128xbf16, #tpu.memory_space<vmem>>, vector<12x128xbf16>
    %cst = arith.constant dense<0.000000e+00> : vector<8x128xf32>
    %3 = tpu.matmul %1, %2, %cst {dimension_numbers = #tpu.dot_dimension_numbers<[1], [0], [0], [1], [0, 0, 1, 1], [], []>} : vector<8x12xbf16>, vector<12x128xbf16>, vector<8x128xf32> -> vector<8x128xf32>
    %c0_3 = arith.constant 0 : index
    %c0_4 = arith.constant 0 : index
    %4 = vector.load %arg2[%c0_3, %c0_4] : memref<8x4xf32, #tpu.memory_space<vmem>>, vector<8x4xf32>
    %5 = arith.truncf %4 : vector<8x4xf32> to vector<8x4xbf16>
    %c0_5 = arith.constant 0 : index
    %c0_6 = arith.constant 0 : index
    %6 = vector.load %arg4[%c0_5, %c0_6] : memref<4x128xbf16, #tpu.memory_space<vmem>>, vector<4x128xbf16>
    %cst_7 = arith.constant dense<0.000000e+00> : vector<8x128xf32>
    %7 = tpu.matmul %5, %6, %cst_7 {dimension_numbers = #tpu.dot_dimension_numbers<[1], [0], [0], [1], [0, 0, 1, 1], [], []>} : vector<8x4xbf16>, vector<4x128xbf16>, vector<8x128xf32> -> vector<8x128xf32>
    %8 = arith.addf %3, %7 : vector<8x128xf32>
    %c0_8 = arith.constant 0 : index
    %c0_9 = arith.constant 0 : index
    %9 = vector.load %arg5[%c0_8, %c0_9] : memref<1x128xf32, #tpu.memory_space<vmem>>, vector<1x128xf32>
    %10 = vector.broadcast %9 : vector<1x128xf32> to vector<8x128xf32>
    %11 = arith.addf %8, %10 : vector<8x128xf32>
    %cst_10 = arith.constant 0.000000e+00 : f32
    %12 = vector.broadcast %cst_10 : f32 to vector<8x128xf32>
    %13 = arith.maximumf %11, %12 : vector<8x128xf32>
    %14 = arith.truncf %13 : vector<8x128xf32> to vector<8x128xbf16>
    %c0_11 = arith.constant 0 : index
    %c0_12 = arith.constant 0 : index
    %15 = vector.load %arg6[%c0_11, %c0_12] : memref<128x128xbf16, #tpu.memory_space<vmem>>, vector<128x128xbf16>
    %cst_13 = arith.constant dense<0.000000e+00> : vector<8x128xf32>
    %16 = tpu.matmul %14, %15, %cst_13 {dimension_numbers = #tpu.dot_dimension_numbers<[1], [0], [0], [1], [0, 0, 1, 1], [], []>} : vector<8x128xbf16>, vector<128x128xbf16>, vector<8x128xf32> -> vector<8x128xf32>
    %c0_14 = arith.constant 0 : index
    %c0_15 = arith.constant 0 : index
    %17 = vector.load %arg7[%c0_14, %c0_15] : memref<1x128xf32, #tpu.memory_space<vmem>>, vector<1x128xf32>
    %18 = vector.broadcast %17 : vector<1x128xf32> to vector<8x128xf32>
    %19 = arith.addf %16, %18 : vector<8x128xf32>
    %cst_16 = arith.constant 0.000000e+00 : f32
    %20 = vector.broadcast %cst_16 : f32 to vector<8x128xf32>
    %21 = arith.maximumf %19, %20 : vector<8x128xf32>
    %22 = arith.truncf %21 : vector<8x128xf32> to vector<8x128xbf16>
    %c0_17 = arith.constant 0 : index
    %c0_18 = arith.constant 0 : index
    %23 = vector.load %arg8[%c0_17, %c0_18] : memref<128x128xbf16, #tpu.memory_space<vmem>>, vector<128x128xbf16>
    %cst_19 = arith.constant dense<0.000000e+00> : vector<8x128xf32>
    %24 = tpu.matmul %22, %23, %cst_19 {dimension_numbers = #tpu.dot_dimension_numbers<[1], [0], [0], [1], [0, 0, 1, 1], [], []>} : vector<8x128xbf16>, vector<128x128xbf16>, vector<8x128xf32> -> vector<8x128xf32>
    %c0_20 = arith.constant 0 : index
    %c0_21 = arith.constant 0 : index
    %25 = vector.load %arg9[%c0_20, %c0_21] : memref<1x128xf32, #tpu.memory_space<vmem>>, vector<1x128xf32>
    %26 = vector.broadcast %25 : vector<1x128xf32> to vector<8x128xf32>
    %27 = arith.addf %24, %26 : vector<8x128xf32>
    %cst_22 = arith.constant 0.000000e+00 : f32
    %28 = vector.broadcast %cst_22 : f32 to vector<8x128xf32>
    %29 = arith.maximumf %27, %28 : vector<8x128xf32>
    %30 = arith.truncf %29 : vector<8x128xf32> to vector<8x128xbf16>
    %c0_23 = arith.constant 0 : index
    %c0_24 = arith.constant 0 : index
    %31 = vector.load %arg10[%c0_23, %c0_24] : memref<128x128xbf16, #tpu.memory_space<vmem>>, vector<128x128xbf16>
    %cst_25 = arith.constant dense<0.000000e+00> : vector<8x128xf32>
    %32 = tpu.matmul %30, %31, %cst_25 {dimension_numbers = #tpu.dot_dimension_numbers<[1], [0], [0], [1], [0, 0, 1, 1], [], []>} : vector<8x128xbf16>, vector<128x128xbf16>, vector<8x128xf32> -> vector<8x128xf32>
    %c0_26 = arith.constant 0 : index
    %c0_27 = arith.constant 0 : index
    %33 = vector.load %arg11[%c0_26, %c0_27] : memref<1x128xf32, #tpu.memory_space<vmem>>, vector<1x128xf32>
    %34 = vector.broadcast %33 : vector<1x128xf32> to vector<8x128xf32>
    %35 = arith.addf %32, %34 : vector<8x128xf32>
    %36 = math.tanh %35 : vector<8x128xf32>
    %c0_28 = arith.constant 0 : index
    %c0_29 = arith.constant 0 : index
    %37 = vector.load %arg12[%c0_28, %c0_29] : memref<8x128xf32, #tpu.memory_space<vmem>>, vector<8x128xf32>
    tpu.vector_store %arg12[%c0_28, %c0_29], %36 {strides = array<i32>} : memref<8x128xf32, #tpu.memory_space<vmem>>, vector<8x128xf32>,
    return
  }
  func.func @transform_0(%arg0: i32) -> (i32, i32) {
    %c0_i32 = arith.constant 0 : i32
    %c0_i32_0 = arith.constant 0 : i32
    return %arg0, %c0_i32 : i32, i32
  }
  func.func @transform_1(%arg0: i32) -> (i32, i32) {
    %c0_i32 = arith.constant 0 : i32
    %c0_i32_0 = arith.constant 0 : i32
    return %arg0, %c0_i32 : i32, i32
  }
  func.func @transform_2(%arg0: i32) -> (i32, i32) {
    %c0_i32 = arith.constant 0 : i32
    %c0_i32_0 = arith.constant 0 : i32
    %c0_i32_1 = arith.constant 0 : i32
    return %c0_i32, %c0_i32_0 : i32, i32
  }
  func.func @transform_3(%arg0: i32) -> (i32, i32) {
    %c0_i32 = arith.constant 0 : i32
    %c0_i32_0 = arith.constant 0 : i32
    %c0_i32_1 = arith.constant 0 : i32
    return %c0_i32, %c0_i32_0 : i32, i32
  }
  func.func @transform_4(%arg0: i32) -> (i32, i32) {
    %c0_i32 = arith.constant 0 : i32
    %c0_i32_0 = arith.constant 0 : i32
    %c0_i32_1 = arith.constant 0 : i32
    return %c0_i32, %c0_i32_0 : i32, i32
  }
  func.func @transform_5(%arg0: i32) -> (i32, i32) {
    %c0_i32 = arith.constant 0 : i32
    %c0_i32_0 = arith.constant 0 : i32
    %c0_i32_1 = arith.constant 0 : i32
    return %c0_i32, %c0_i32_0 : i32, i32
  }
  func.func @transform_6(%arg0: i32) -> (i32, i32) {
    %c0_i32 = arith.constant 0 : i32
    %c0_i32_0 = arith.constant 0 : i32
    %c0_i32_1 = arith.constant 0 : i32
    return %c0_i32, %c0_i32_0 : i32, i32
  }
  func.func @transform_7(%arg0: i32) -> (i32, i32) {
    %c0_i32 = arith.constant 0 : i32
    %c0_i32_0 = arith.constant 0 : i32
    %c0_i32_1 = arith.constant 0 : i32
    return %c0_i32, %c0_i32_0 : i32, i32
  }
  func.func @transform_8(%arg0: i32) -> (i32, i32) {
    %c0_i32 = arith.constant 0 : i32
    %c0_i32_0 = arith.constant 0 : i32
    %c0_i32_1 = arith.constant 0 : i32
    return %c0_i32, %c0_i32_0 : i32, i32
  }
  func.func @transform_9(%arg0: i32) -> (i32, i32) {
    %c0_i32 = arith.constant 0 : i32
    %c0_i32_0 = arith.constant 0 : i32
    %c0_i32_1 = arith.constant 0 : i32
    return %c0_i32, %c0_i32_0 : i32, i32
  }
  func.func @transform_10(%arg0: i32) -> (i32, i32) {
    %c0_i32 = arith.constant 0 : i32
    %c0_i32_0 = arith.constant 0 : i32
    %c0_i32_1 = arith.constant 0 : i32
    return %c0_i32, %c0_i32_0 : i32, i32
  }
  func.func @transform_11(%arg0: i32) -> (i32, i32) {
    %c0_i32 = arith.constant 0 : i32
    %c0_i32_0 = arith.constant 0 : i32
    return %arg0, %c0_i32 : i32, i32
  }
}

</mosaic_0001>

<bundles_post_ra>
// kernel: actor_forward.1
= control target key start
LH: loop header
LB: loop body
LE: loop exit
PB: predicated region body
PF: predicated region fallthrough
CT: control target
= control target key end

     0   :  { %16 = vsyncpa [#allocation3], 0  ;;  %s720_s0 = inlined_call_operand.vmem [shape: f32[8,12], index: 0, kind: input, shape index: {}]   ;;  %s721_s1 = inlined_call_operand.vmem [shape: f32[8,4], index: 1, kind: input, shape index: {}]   ;;  %s722_s2 = inlined_call_operand.vmem [shape: bf16[12,128], index: 2, kind: input, shape index: {}]   ;;  %s723_s3 = inlined_call_operand.vmem [shape: bf16[4,128], index: 3, kind: input, shape index: {}]   ;;  %s724_s4 = inlined_call_operand.vmem [shape: f32[1,128], index: 4, kind: input, shape index: {}]   ;;  %s725_s5 = inlined_call_operand.hbm [shape: bf16[128,128], index: 5, kind: input, shape index: {}]   ;;  %s726_s6 = inlined_call_operand.vmem [shape: f32[1,128], index: 6, kind: input, shape index: {}]   ;;  %s727_s7 = inlined_call_operand.hbm [shape: bf16[128,128], index: 7, kind: input, shape index: {}]   ;;  %s728_s8 = inlined_call_operand.vmem [shape: f32[1,128], index: 8, kind: input, shape index: {}]   ;;  %s729_s9 = inlined_call_operand.hbm [shape: bf16[128,128], index: 9, kind: input, shape index: {}]   ;;  %s730_s10 = inlined_call_operand.vmem [shape: f32[1,128], index: 10, kind: input, shape index: {}]   ;;  %s731_s11 = inlined_call_operand.vmem [shape: f32[8,128], index: 11, kind: output, shape index: {}]  }
   0x1   :  { %17 = vsyncpa [#allocation5], 0  ;;  %s47_s19 = sshll.u32 %s727_s7, 4  ;;  %s616_s20 = smov [#allocation4]   ;;  %s48_s19 = int_to_ptr.hbm [resolvable:$true] %s47_s19 }
   0x2   :  { %s49_s21 = sshll.u32 %s616_s20, 4  ;;  %s32_s24 = sshll.u32 %s725_s5, 4  ;;  %s50_s21 = int_to_ptr.vmem [resolvable:$true] %s49_s21  ;;  %s33_s24 = int_to_ptr.hbm [resolvable:$true] %s32_s24 }
   0x3   :  { %s617_s25 = smov 64   ;;  %s618_s26 = smov 4  }
   0x4   :  { %55 = dma.hbm_to_vmem [thread:$0]  %s48_s19, 1024, %s50_s21, [#allocation5], %s617_s25, %s617_s25, %s618_s26  }
   0x5   :  { %s619_s27 = smov [#allocation2]   ;;  %s62_s12 = sshll.u32 %s729_s9, 4  ;;  %s63_s12 = int_to_ptr.hbm [resolvable:$true] %s62_s12 }
   0x6   :  { %s34_s28 = sshll.u32 %s619_s27, 4  ;;  %s620_s7 = smov [#allocation6]   ;;  %s35_s28 = int_to_ptr.vmem [resolvable:$true] %s34_s28 }
   0x7   :  { %40 = dma.hbm_to_vmem [thread:$0]  %s33_s24, 1024, %s35_s28, [#allocation3], %s617_s25, %s617_s25, %s618_s26  }
   0x8   :  { %s64_s13 = sshll.u32 %s620_s7, 4  ;;  %s65_s13 = int_to_ptr.vmem [resolvable:$true] %s64_s13 }
   0x9   :  { %70 = dma.hbm_to_vmem [thread:$0]  %s63_s12, 1024, %s65_s13, [#allocation5], %s617_s25, %s617_s25, %s618_s26  }
   0xa   :  { %612 = dma.done.wait [#allocation3], 1024  }
   0xb   :  { %613 = vsyncadd [#allocation3], 4294966272 }
   0xc   :  { %614 = dma.done.wait [#allocation5], 2048  }
   0xd   :  { %615 = vsyncadd [#allocation5], 4294965248  ;;  %vm97_vm0 = vcmask 1041408   ;;  %v92_v0 = vld [vmem:[%s723_s3] sm:$0x3]  ;;  %vm123_vm1 = vcmask 1045504  }
   0xe   :  { %v90_v1 = vld [vmem:[%s721_s1] sm:$0xff]  ;;  %v99_v3 = vsel %vm97_vm0, %v92_v0, 0  ;;  %v512_v6 = vld [vmem:[#allocation2 + $0x38] sm:$0xff]  ;;  %vm93_vm2 = vcmask 31744   ;;  %v511_v8 = vld [vmem:[#allocation2 + $0x30] sm:$0xff]  ;;  %vm119_vm3 = vcmask 97280  }
   0xf   :  { %v405_v2 = vld [vmem:[%s722_s2] sm:$0xf]  ;;  %v91_v4 = vpack.c.bf16 %v90_v1, %v90_v1  ;;  %v504_v5 = vld [vmem:[%s722_s2] sm:$0x30]  ;;  %108 = vmatpush.bf16.msra.mxu1 %v99_v3  ;;  %215 = vmatpush.bf16.msra.mxu2 %v512_v6  ;;  %v510_v12 = vld [vmem:[#allocation2 + $0x28] sm:$0xff] }
  0x10   :  { %v406_v7 = vor.u32 %v504_v5, %v405_v2  ;;  %v86_v10 = vld [vmem:[%s720_s0] sm:$0xff]  ;;  %v508_v14 = vld [vmem:[#allocation2 + $0x18] sm:$0xff]  ;;  %v507_v15 = vld [vmem:[#allocation2 + $0x10] sm:$0xff] }
  0x11   :  { %v87_v11 = vpack.c.bf16 %v86_v10, %v86_v10  ;;  %v509_v13 = vld [vmem:[#allocation2 + $0x20] sm:$0xff]  ;;  %v506_v16 = vld [vmem:[#allocation2 + $0x8] sm:$0xff]  ;;  %v520_v18 = vld [vmem:[#allocation4 + $0x38] sm:$0xff] }
  0x12   :  { %v125_v9 = vsel %vm123_vm1, %v406_v7, 0  ;;  %402 = vmatmul.msk.bf16.vlgmr.msra.gmra.mxu1 %vm93_vm2, %v91_v4  ;;  %v505_v17 = vld [vmem:[#allocation2] sm:$0xff]  ;;  %298 = vmatpush.bf16.msra.mxu3 %v520_v18  ;;  %v519_v19 = vld [vmem:[#allocation4 + $0x30] sm:$0xff]  ;;  %v518_v20 = vld [vmem:[#allocation4 + $0x28] sm:$0xff] }
  0x13   :  { %134 = vmatpush.bf16.msrb.mxu1 %v125_v9  ;;  %216 = vmatpush.bf16.msra.mxu2 %v511_v8  ;;  %v517_v22 = vld [vmem:[#allocation4 + $0x20] sm:$0xff]  ;;  %v516_v23 = vld [vmem:[#allocation4 + $0x18] sm:$0xff]  ;;  %v515_v25 = vld [vmem:[#allocation4 + $0x10] sm:$0xff] }
  0x14   :  { %v534_v26 = vld [vmem:[%s724_s4] ss:$0 sm:$0xff]  ;;  %v514_v33 = vld [vmem:[#allocation4 + $0x8] sm:$0xff]  ;;  %v528_v35 = vld [vmem:[#allocation6 + $0x38] sm:$0xff] }
  0x15   :  { %v513_v34 = vld [vmem:[#allocation4] sm:$0xff]  ;;  %381 = vmatpush.bf16.msra.mxu0 %v528_v35  ;;  %v527_v36 = vld [vmem:[#allocation6 + $0x30] sm:$0xff]  ;;  %v526_v37 = vld [vmem:[#allocation6 + $0x28] sm:$0xff] }
  0x16   :  { %299 = vmatpush.bf16.msra.mxu3 %v519_v19  ;;  %v525_v38 = vld [vmem:[#allocation6 + $0x20] sm:$0xff]  ;;  %v524_v39 = vld [vmem:[#allocation6 + $0x18] sm:$0xff]  ;;  %v523_v40 = vld [vmem:[#allocation6 + $0x10] sm:$0xff] }
  0x17   :  { %217 = vmatpush.bf16.msra.mxu2 %v510_v12  ;;  %v535_v41 = vld [vmem:[%s726_s6] ss:$0 sm:$0xff]  ;;  %v522_v47 = vld [vmem:[#allocation6 + $0x8] sm:$0xff] }
  0x18   :  { %v521_v48 = vld [vmem:[#allocation6] sm:$0xff] }
  0x19   :  { %382 = vmatpush.bf16.msra.mxu0 %v527_v36  ;;  %v536_v49 = vld [vmem:[%s728_s8] ss:$0 sm:$0xff] }
  0x1a   :  { %300 = vmatpush.bf16.msra.mxu3 %v518_v20  ;;  %v537_v55 = vld [vmem:[%s730_s10] ss:$0 sm:$0xff] }
  0x1b   :  { %218 = vmatpush.bf16.msra.mxu2 %v509_v13 }
  0x1d   :  { %383 = vmatpush.bf16.msra.mxu0 %v526_v37 }
  0x1e   :  { %301 = vmatpush.bf16.msra.mxu3 %v517_v22 }
  0x1f   :  { %219 = vmatpush.bf16.msra.mxu2 %v508_v14 }
  0x21   :  { %384 = vmatpush.bf16.msra.mxu0 %v525_v38 }
  0x22   :  { %407 = vmatmul.msk.bf16.vlgmr.msrb.gmra.mxu1 %vm119_vm3, %v87_v11  ;;  %302 = vmatpush.bf16.msra.mxu3 %v516_v23 }
  0x23   :  { %220 = vmatpush.bf16.msra.mxu2 %v507_v15 }
  0x25   :  { %385 = vmatpush.bf16.msra.mxu0 %v524_v39 }
  0x26   :  { %303 = vmatpush.bf16.msra.mxu3 %v515_v25 }
  0x27   :  { %221 = vmatpush.bf16.msra.mxu2 %v506_v16 }
  0x29   :  { %386 = vmatpush.bf16.msra.mxu0 %v523_v40 }
  0x2a   :  { %304 = vmatpush.bf16.msra.mxu3 %v514_v33 }
  0x2b   :  { %222 = vmatpush.bf16.msra.mxu2 %v505_v17 }
  0x2d   :  { %387 = vmatpush.bf16.msra.mxu0 %v522_v47 }
  0x2e   :  { %305 = vmatpush.bf16.msra.mxu3 %v513_v34 }
  0x31   :  { %388 = vmatpush.bf16.msra.mxu0 %v521_v48 }
  0x8f   :  { %v110_v21 = vpop.f32.mrf.mxu1 }
  0x97   :  { %v112_v24 = vpop.f32.mrf.mxu1 }
  0x9f   :  { %v136_v27 = vpop.f32.mrf.mxu1 }
  0xa0   :  { %v137_v28 = vadd.f32 %v136_v27, %v110_v21 }
  0xa2   :  { %v144_v29 = vadd.f32 %v534_v26, %v137_v28 }
  0xa4   :  { %v145_v30 = vmax.f32 %v144_v29, 0.0 }
  0xa6   :  { %v146_v31 = vpack.c.bf16 %v145_v30, %v145_v30 }
  0xa7   :  { %v138_v32 = vpop.f32.mrf.mxu1 }
  0xa8   :  { %223 = vmatmul.bf16.vlgmr.msra.gmra.mxu2 %v146_v31 }
 0x12b   :  { %v224_v42 = vpop.f32.mrf.mxu2 }
 0x12c   :  { %v225_v43 = vadd.f32 %v535_v41, %v224_v42 }
 0x12e   :  { %v228_v44 = vmax.f32 %v225_v43, 0.0 }
 0x130   :  { %v229_v45 = vpack.c.bf16 %v228_v44, %v228_v44 }
 0x132   :  { %306 = vmatmul.bf16.vlgmr.msra.gmra.mxu3 %v229_v45 }
 0x133   :  { %v226_v46 = vpop.f32.mrf.mxu2 }
 0x1b5   :  { %v307_v50 = vpop.f32.mrf.mxu3 }
 0x1b6   :  { %v308_v51 = vadd.f32 %v536_v49, %v307_v50 }
 0x1b8   :  { %v311_v52 = vmax.f32 %v308_v51, 0.0 }
 0x1ba   :  { %v312_v53 = vpack.c.bf16 %v311_v52, %v311_v52 }
 0x1bc   :  { %389 = vmatmul.bf16.vlgmr.msra.gmra.mxu0 %v312_v53 }
 0x1bd   :  { %v309_v54 = vpop.f32.mrf.mxu3 }
 0x239   :  { %v390_v56 = vpop.f32.mrf.mxu0 }
 0x23a   :  { %v391_v57 = vadd.f32 %v537_v55, %v390_v56 }
 0x23c   :  { %538 = vtanh.f32 %v391_v57 }
 0x241   :  { %v392_v58 = vpop.f32.mrf.mxu0 }
 0x242   :  { %v539_v59 = vpop.eup %538 }
 0x243   :  { %395 = vst [vmem:[%s731_s11] sm:$0xff] %v539_v59 }
 0x244   :  { %400 = vsyncpa [#allocation3], 1 }
 0x245   :  { %401 = vsyncpa [#allocation5], 1 }

</bundles_post_ra>
